<compile_context>
chip_gen: v5e
topology: v5e:2x2
jax: 0.10.0
libtpu: 0.0.40
codegen_flags: <defaults>
</compile_context>

<pallas_src>
import math
import functools

import jax
import jax.numpy as jnp
from jax import lax
from jax.experimental import pallas as pl
from jax.experimental.pallas import tpu as pltpu


def _sparse_attention_kernel(x_ref, w_ref, b_ref, o_ref, *, num_heads, head_dim):
    # x_ref : (1, N, E)   current batch slab
    # w_ref : (E, 3E)     [Wq@fp | Wk@fp | Wv] (in x out layout), VMEM-resident
    # b_ref : (1, 3E)     [bq@fp | bk@fp | bv], VMEM-resident
    # o_ref : (1, N, E)   lane-dense output slab (final (B, N, E) layout)
    embed = num_heads * head_dim
    x = x_ref[0]                                                      # (N, E)

    # One fused projection: lane width 3E keeps MXU columns busy and replaces
    # three narrow per-head matmuls (plus two fp matmuls) with a single push.
    qkv = jnp.dot(x, w_ref[...], preferred_element_type=jnp.float32) + b_ref[...]

    scale = 1.0 / math.sqrt(head_dim)
    for h in range(num_heads):                      # static, short loop over heads
        lo = h * head_dim
        q = qkv[:, lo:lo + head_dim]                                  # fp folded in
        k = qkv[:, embed + lo:embed + lo + head_dim]
        v = qkv[:, 2 * embed + lo:2 * embed + lo + head_dim]

        # q @ k^T without materializing k.T: contract last dims on the MXU.
        s = lax.dot_general(q, k, (((1,), (1,)), ((), ())),
                            preferred_element_type=jnp.float32) * scale  # (N, N)

        # Numerically stable softmax; normalization is deferred to after the
        # PV matmul so the reciprocal-multiply touches (N, D) not (N, N).
        s = s - jnp.max(s, axis=-1, keepdims=True)
        p = jnp.exp(s)
        denom = jnp.sum(p, axis=-1, keepdims=True)                    # (N, 1)
        out_h = jnp.dot(p, v, preferred_element_type=jnp.float32)     # (N, D)
        out_h = out_h * pl.reciprocal(denom, approx=False)

        o_ref[0, :, lo:lo + head_dim] = out_h.astype(o_ref.dtype)     # static lane slice


def sparse_attention(x, wq, bq, wk, bk, wv, bv, fp, num_heads):
    """x: (B,N,E); wq/wk/wv: (E,E) PyTorch layout (out,in); b*: (E,); fp: (D,D)."""
    B, N, E = x.shape
    H = num_heads
    D = E // H
    assert D * H == E, "embed_size must be divisible by num_heads"

    def fold_fp(w, b):
        # y = x @ W.T + b, then per-head @ fp  ==  x @ (W.T with fp folded) + (b @ fp)
        wt = w.T.reshape(E, H, D)                           # (E_in, H, D_out)
        wf = jnp.einsum('ehd,di->ehi', wt, fp).reshape(E, E)
        bf = jnp.einsum('hd,di->hi', b.reshape(H, D), fp).reshape(E)
        return wf, bf

    wq_f, bq_f = fold_fp(wq, bq)
    wk_f, bk_f = fold_fp(wk, bk)
    w_all = jnp.concatenate([wq_f, wk_f, wv.T], axis=1)               # (E, 3E)
    b_all = jnp.concatenate([bq_f, bk_f, bv]).reshape(1, 3 * E)       # (1, 3E)

    kernel = functools.partial(_sparse_attention_kernel, num_heads=H, head_dim=D)

    return pl.pallas_call(
        kernel,
        out_shape=jax.ShapeDtypeStruct((B, N, E), x.dtype),
        grid_spec=pltpu.PrefetchScalarGridSpec(
            num_scalar_prefetch=0,
            grid=(B,),
            in_specs=[
                pl.BlockSpec((1, N, E), lambda b: (b, 0, 0)),   # x (per batch)
                pl.BlockSpec((E, 3 * E), lambda b: (0, 0)),     # fused weights (resident)
                pl.BlockSpec((1, 3 * E), lambda b: (0, 0)),     # fused biases  (resident)
            ],
            out_specs=pl.BlockSpec((1, N, E), lambda b: (b, 0, 0)),   # lane-dense output
        ),
        compiler_params=pltpu.CompilerParams(
            dimension_semantics=("parallel",),   # shards batch across TCs on v7x
            # Default scoped VMEM is 16/32 MiB (v5e / v6e+); raised here, and
            # should scale with N, E (headroom: 64 MiB v7x, 128 MiB v5e/v6e).
            vmem_limit_bytes=32 * 1024 * 1024,
        ),
    )(x, w_all, b_all)


def sparse_attention_reference(x, wq, bq, wk, bk, wv, bv, fp, num_heads):
    """Pure-JAX mirror of the PyTorch forward, for correctness checking."""
    B, N, E = x.shape
    H = num_heads
    D = E // H
    q = (x @ wq.T + bq).reshape(B, N, H, D)
    k = (x @ wk.T + bk).reshape(B, N, H, D)
    v = (x @ wv.T + bv).reshape(B, N, H, D)
    q = jnp.einsum('bnhe,ei->bnhi', q, fp)
    k = jnp.einsum('bnhe,ei->bnhi', k, fp)
    scores = jnp.einsum('bnhi,bmhi->bnhm', q, k) / math.sqrt(D)
    attn = jax.nn.softmax(scores, axis=-1)
    return jnp.einsum('bnhm,bmhe->bnhe', attn, v).reshape(B, N, E)


if __name__ == "__main__":
    # Small, deterministic synthetic problem.
    B, N, E, H = 2, 16, 32, 4          # head_dim D = 8
    key = jax.random.PRNGKey(0)
    kx, kwq, kbq, kwk, kbk, kwv, kbv, kfp = jax.random.split(key, 8)

    x  = jax.random.normal(kx,  (B, N, E), dtype=jnp.float32)
    wq = jax.random.normal(kwq, (E, E), dtype=jnp.float32) * 0.1
    bq = jax.random.normal(kbq, (E,),   dtype=jnp.float32) * 0.1
    wk = jax.random.normal(kwk, (E, E), dtype=jnp.float32) * 0.1
    bk = jax.random.normal(kbk, (E,),   dtype=jnp.float32) * 0.1
    wv = jax.random.normal(kwv, (E, E), dtype=jnp.float32) * 0.1
    bv = jax.random.normal(kbv, (E,),   dtype=jnp.float32) * 0.1
    fp = jax.random.normal(kfp, (E // H, E // H), dtype=jnp.float32)

    out = sparse_attention(x, wq, bq, wk, bk, wv, bv, fp, H)
    out = jax.block_until_ready(out)

    ref = sparse_attention_reference(x, wq, bq, wk, bk, wv, bv, fp, H)
    ref = jax.block_until_ready(ref)

    assert out.shape == (B, N, E)
    assert jnp.allclose(out, ref, atol=1e-4, rtol=1e-4), "Pallas output mismatch vs reference"

    print("KERNEL_OK")
</pallas_src>

<mosaic_0001>
module attributes {stable_mosaic.version = 11 : i64} {
  func.func @_sparse_attention_kernel(%arg0: i32, %arg1: memref<1x16x32xf32, #tpu.memory_space<vmem>>, %arg2: memref<32x96xf32, #tpu.memory_space<vmem>>, %arg3: memref<1x96xf32, #tpu.memory_space<vmem>>, %arg4: memref<1x16x32xf32, #tpu.memory_space<vmem>>) attributes {dimension_semantics = [#tpu.dimension_semantics<parallel>], iteration_bounds = array<i64: 2>, scalar_prefetch = 0 : i64, scratch_operands = 0 : i64, tpu.core_type = #tpu.core_type<tc>, window_params = [{transform_indices = @transform_0, window_bounds = array<i64: 1, 16, 32>}, {pipeline_mode = #tpu.pipeline_mode<synchronous>, transform_indices = @transform_1, window_bounds = array<i64: 32, 96>}, {pipeline_mode = #tpu.pipeline_mode<synchronous>, transform_indices = @transform_2, window_bounds = array<i64: 1, 96>}, {transform_indices = @transform_3, window_bounds = array<i64: 1, 16, 32>}]} {
    %c0 = arith.constant 0 : index
    %c0_0 = arith.constant 0 : index
    %c0_1 = arith.constant 0 : index
    %0 = vector.load %arg1[%c0, %c0_0, %c0_1] : memref<1x16x32xf32, #tpu.memory_space<vmem>>, vector<1x16x32xf32>
    %1 = vector.shape_cast %0 : vector<1x16x32xf32> to vector<16x32xf32>
    %c0_2 = arith.constant 0 : index
    %c0_3 = arith.constant 0 : index
    %2 = vector.load %arg2[%c0_2, %c0_3] : memref<32x96xf32, #tpu.memory_space<vmem>>, vector<32x96xf32>
    %cst = arith.constant dense<0.000000e+00> : vector<16x96xf32>
    %3 = tpu.matmul %1, %2, %cst {dimension_numbers = #tpu.dot_dimension_numbers<[1], [0], [0], [1], [0, 0, 1, 1], [], []>} : vector<16x32xf32>, vector<32x96xf32>, vector<16x96xf32> -> vector<16x96xf32>
    %c0_4 = arith.constant 0 : index
    %c0_5 = arith.constant 0 : index
    %4 = vector.load %arg3[%c0_4, %c0_5] : memref<1x96xf32, #tpu.memory_space<vmem>>, vector<1x96xf32>
    %5 = vector.broadcast %4 : vector<1x96xf32> to vector<16x96xf32>
    %6 = arith.addf %3, %5 : vector<16x96xf32>
    %7 = vector.extract_strided_slice %6 {offsets = [0, 0], sizes = [16, 8], strides = [1, 1]} : vector<16x96xf32> to vector<16x8xf32>
    %8 = vector.extract_strided_slice %6 {offsets = [0, 32], sizes = [16, 8], strides = [1, 1]} : vector<16x96xf32> to vector<16x8xf32>
    %9 = vector.extract_strided_slice %6 {offsets = [0, 64], sizes = [16, 8], strides = [1, 1]} : vector<16x96xf32> to vector<16x8xf32>
    %cst_6 = arith.constant dense<0.000000e+00> : vector<16x16xf32>
    %10 = tpu.matmul %7, %8, %cst_6 {dimension_numbers = #tpu.dot_dimension_numbers<[1], [1], [0], [0], [0, 0, 1, 0], [], []>} : vector<16x8xf32>, vector<16x8xf32>, vector<16x16xf32> -> vector<16x16xf32>
    %cst_7 = arith.constant 0.353553385 : f32
    %11 = vector.broadcast %cst_7 : f32 to vector<16x16xf32>
    %12 = arith.mulf %10, %11 : vector<16x16xf32>
    %cst_8 = arith.constant dense<0xFF800000> : vector<16xf32>
    %13 = vector.multi_reduction <maximumf>, %12, %cst_8 [1] : vector<16x16xf32> to vector<16xf32>
    %14 = vector.shape_cast %13 : vector<16xf32> to vector<16x1xf32>
    %15 = vector.broadcast %14 : vector<16x1xf32> to vector<16x16xf32>
    %16 = arith.subf %12, %15 : vector<16x16xf32>
    %17 = math.exp %16 : vector<16x16xf32>
    %cst_9 = arith.constant dense<0.000000e+00> : vector<16xf32>
    %18 = vector.multi_reduction <add>, %17, %cst_9 [1] : vector<16x16xf32> to vector<16xf32>
    %19 = vector.shape_cast %18 : vector<16xf32> to vector<16x1xf32>
    %cst_10 = arith.constant dense<0.000000e+00> : vector<16x8xf32>
    %20 = tpu.matmul %17, %9, %cst_10 {dimension_numbers = #tpu.dot_dimension_numbers<[1], [0], [0], [1], [0, 0, 1, 1], [], []>} : vector<16x16xf32>, vector<16x8xf32>, vector<16x8xf32> -> vector<16x8xf32>
    %21 = tpu.reciprocal %19 : vector<16x1xf32> -> vector<16x1xf32>
    %22 = vector.broadcast %21 : vector<16x1xf32> to vector<16x8xf32>
    %23 = arith.mulf %20, %22 : vector<16x8xf32>
    %c0_11 = arith.constant 0 : index
    %c0_12 = arith.constant 0 : index
    %c0_13 = arith.constant 0 : index
    %24 = vector.load %arg4[%c0_11, %c0_12, %c0_13] : memref<1x16x32xf32, #tpu.memory_space<vmem>>, vector<1x16x8xf32>
    %25 = vector.shape_cast %24 : vector<1x16x8xf32> to vector<16x8xf32>
    %26 = vector.shape_cast %23 : vector<16x8xf32> to vector<1x16x8xf32>
    tpu.vector_store %arg4[%c0_11, %c0_12, %c0_13], %26 {strides = array<i32>} : memref<1x16x32xf32, #tpu.memory_space<vmem>>, vector<1x16x8xf32>,
    %27 = vector.extract_strided_slice %6 {offsets = [0, 8], sizes = [16, 8], strides = [1, 1]} : vector<16x96xf32> to vector<16x8xf32>
    %28 = vector.extract_strided_slice %6 {offsets = [0, 40], sizes = [16, 8], strides = [1, 1]} : vector<16x96xf32> to vector<16x8xf32>
    %29 = vector.extract_strided_slice %6 {offsets = [0, 72], sizes = [16, 8], strides = [1, 1]} : vector<16x96xf32> to vector<16x8xf32>
    %cst_14 = arith.constant dense<0.000000e+00> : vector<16x16xf32>
    %30 = tpu.matmul %27, %28, %cst_14 {dimension_numbers = #tpu.dot_dimension_numbers<[1], [1], [0], [0], [0, 0, 1, 0], [], []>} : vector<16x8xf32>, vector<16x8xf32>, vector<16x16xf32> -> vector<16x16xf32>
    %cst_15 = arith.constant 0.353553385 : f32
    %31 = vector.broadcast %cst_15 : f32 to vector<16x16xf32>
    %32 = arith.mulf %30, %31 : vector<16x16xf32>
    %cst_16 = arith.constant dense<0xFF800000> : vector<16xf32>
    %33 = vector.multi_reduction <maximumf>, %32, %cst_16 [1] : vector<16x16xf32> to vector<16xf32>
    %34 = vector.shape_cast %33 : vector<16xf32> to vector<16x1xf32>
    %35 = vector.broadcast %34 : vector<16x1xf32> to vector<16x16xf32>
    %36 = arith.subf %32, %35 : vector<16x16xf32>
    %37 = math.exp %36 : vector<16x16xf32>
    %cst_17 = arith.constant dense<0.000000e+00> : vector<16xf32>
    %38 = vector.multi_reduction <add>, %37, %cst_17 [1] : vector<16x16xf32> to vector<16xf32>
    %39 = vector.shape_cast %38 : vector<16xf32> to vector<16x1xf32>
    %cst_18 = arith.constant dense<0.000000e+00> : vector<16x8xf32>
    %40 = tpu.matmul %37, %29, %cst_18 {dimension_numbers = #tpu.dot_dimension_numbers<[1], [0], [0], [1], [0, 0, 1, 1], [], []>} : vector<16x16xf32>, vector<16x8xf32>, vector<16x8xf32> -> vector<16x8xf32>
    %41 = tpu.reciprocal %39 : vector<16x1xf32> -> vector<16x1xf32>
    %42 = vector.broadcast %41 : vector<16x1xf32> to vector<16x8xf32>
    %43 = arith.mulf %40, %42 : vector<16x8xf32>
    %c0_19 = arith.constant 0 : index
    %c0_20 = arith.constant 0 : index
    %c8 = arith.constant 8 : index
    %44 = vector.load %arg4[%c0_19, %c0_20, %c8] : memref<1x16x32xf32, #tpu.memory_space<vmem>>, vector<1x16x8xf32>
    %45 = vector.shape_cast %44 : vector<1x16x8xf32> to vector<16x8xf32>
    %46 = vector.shape_cast %43 : vector<16x8xf32> to vector<1x16x8xf32>
    tpu.vector_store %arg4[%c0_19, %c0_20, %c8], %46 {strides = array<i32>} : memref<1x16x32xf32, #tpu.memory_space<vmem>>, vector<1x16x8xf32>,
    %47 = vector.extract_strided_slice %6 {offsets = [0, 16], sizes = [16, 8], strides = [1, 1]} : vector<16x96xf32> to vector<16x8xf32>
    %48 = vector.extract_strided_slice %6 {offsets = [0, 48], sizes = [16, 8], strides = [1, 1]} : vector<16x96xf32> to vector<16x8xf32>
    %49 = vector.extract_strided_slice %6 {offsets = [0, 80], sizes = [16, 8], strides = [1, 1]} : vector<16x96xf32> to vector<16x8xf32>
    %cst_21 = arith.constant dense<0.000000e+00> : vector<16x16xf32>
    %50 = tpu.matmul %47, %48, %cst_21 {dimension_numbers = #tpu.dot_dimension_numbers<[1], [1], [0], [0], [0, 0, 1, 0], [], []>} : vector<16x8xf32>, vector<16x8xf32>, vector<16x16xf32> -> vector<16x16xf32>
    %cst_22 = arith.constant 0.353553385 : f32
    %51 = vector.broadcast %cst_22 : f32 to vector<16x16xf32>
    %52 = arith.mulf %50, %51 : vector<16x16xf32>
    %cst_23 = arith.constant dense<0xFF800000> : vector<16xf32>
    %53 = vector.multi_reduction <maximumf>, %52, %cst_23 [1] : vector<16x16xf32> to vector<16xf32>
    %54 = vector.shape_cast %53 : vector<16xf32> to vector<16x1xf32>
    %55 = vector.broadcast %54 : vector<16x1xf32> to vector<16x16xf32>
    %56 = arith.subf %52, %55 : vector<16x16xf32>
    %57 = math.exp %56 : vector<16x16xf32>
    %cst_24 = arith.constant dense<0.000000e+00> : vector<16xf32>
    %58 = vector.multi_reduction <add>, %57, %cst_24 [1] : vector<16x16xf32> to vector<16xf32>
    %59 = vector.shape_cast %58 : vector<16xf32> to vector<16x1xf32>
    %cst_25 = arith.constant dense<0.000000e+00> : vector<16x8xf32>
    %60 = tpu.matmul %57, %49, %cst_25 {dimension_numbers = #tpu.dot_dimension_numbers<[1], [0], [0], [1], [0, 0, 1, 1], [], []>} : vector<16x16xf32>, vector<16x8xf32>, vector<16x8xf32> -> vector<16x8xf32>
    %61 = tpu.reciprocal %59 : vector<16x1xf32> -> vector<16x1xf32>
    %62 = vector.broadcast %61 : vector<16x1xf32> to vector<16x8xf32>
    %63 = arith.mulf %60, %62 : vector<16x8xf32>
    %c0_26 = arith.constant 0 : index
    %c0_27 = arith.constant 0 : index
    %c16 = arith.constant 16 : index
    %64 = vector.load %arg4[%c0_26, %c0_27, %c16] : memref<1x16x32xf32, #tpu.memory_space<vmem>>, vector<1x16x8xf32>
    %65 = vector.shape_cast %64 : vector<1x16x8xf32> to vector<16x8xf32>
    %66 = vector.shape_cast %63 : vector<16x8xf32> to vector<1x16x8xf32>
    tpu.vector_store %arg4[%c0_26, %c0_27, %c16], %66 {strides = array<i32>} : memref<1x16x32xf32, #tpu.memory_space<vmem>>, vector<1x16x8xf32>,
    %67 = vector.extract_strided_slice %6 {offsets = [0, 24], sizes = [16, 8], strides = [1, 1]} : vector<16x96xf32> to vector<16x8xf32>
    %68 = vector.extract_strided_slice %6 {offsets = [0, 56], sizes = [16, 8], strides = [1, 1]} : vector<16x96xf32> to vector<16x8xf32>
    %69 = vector.extract_strided_slice %6 {offsets = [0, 88], sizes = [16, 8], strides = [1, 1]} : vector<16x96xf32> to vector<16x8xf32>
    %cst_28 = arith.constant dense<0.000000e+00> : vector<16x16xf32>
    %70 = tpu.matmul %67, %68, %cst_28 {dimension_numbers = #tpu.dot_dimension_numbers<[1], [1], [0], [0], [0, 0, 1, 0], [], []>} : vector<16x8xf32>, vector<16x8xf32>, vector<16x16xf32> -> vector<16x16xf32>
    %cst_29 = arith.constant 0.353553385 : f32
    %71 = vector.broadcast %cst_29 : f32 to vector<16x16xf32>
    %72 = arith.mulf %70, %71 : vector<16x16xf32>
    %cst_30 = arith.constant dense<0xFF800000> : vector<16xf32>
    %73 = vector.multi_reduction <maximumf>, %72, %cst_30 [1] : vector<16x16xf32> to vector<16xf32>
    %74 = vector.shape_cast %73 : vector<16xf32> to vector<16x1xf32>
    %75 = vector.broadcast %74 : vector<16x1xf32> to vector<16x16xf32>
    %76 = arith.subf %72, %75 : vector<16x16xf32>
    %77 = math.exp %76 : vector<16x16xf32>
    %cst_31 = arith.constant dense<0.000000e+00> : vector<16xf32>
    %78 = vector.multi_reduction <add>, %77, %cst_31 [1] : vector<16x16xf32> to vector<16xf32>
    %79 = vector.shape_cast %78 : vector<16xf32> to vector<16x1xf32>
    %cst_32 = arith.constant dense<0.000000e+00> : vector<16x8xf32>
    %80 = tpu.matmul %77, %69, %cst_32 {dimension_numbers = #tpu.dot_dimension_numbers<[1], [0], [0], [1], [0, 0, 1, 1], [], []>} : vector<16x16xf32>, vector<16x8xf32>, vector<16x8xf32> -> vector<16x8xf32>
    %81 = tpu.reciprocal %79 : vector<16x1xf32> -> vector<16x1xf32>
    %82 = vector.broadcast %81 : vector<16x1xf32> to vector<16x8xf32>
    %83 = arith.mulf %80, %82 : vector<16x8xf32>
    %c0_33 = arith.constant 0 : index
    %c0_34 = arith.constant 0 : index
    %c24 = arith.constant 24 : index
    %84 = vector.load %arg4[%c0_33, %c0_34, %c24] : memref<1x16x32xf32, #tpu.memory_space<vmem>>, vector<1x16x8xf32>
    %85 = vector.shape_cast %84 : vector<1x16x8xf32> to vector<16x8xf32>
    %86 = vector.shape_cast %83 : vector<16x8xf32> to vector<1x16x8xf32>
    tpu.vector_store %arg4[%c0_33, %c0_34, %c24], %86 {strides = array<i32>} : memref<1x16x32xf32, #tpu.memory_space<vmem>>, vector<1x16x8xf32>,
    return
  }
  func.func @transform_0(%arg0: i32) -> (i32, i32, i32) {
    %c0_i32 = arith.constant 0 : i32
    %c0_i32_0 = arith.constant 0 : i32
    %c0_i32_1 = arith.constant 0 : i32
    return %arg0, %c0_i32, %c0_i32_0 : i32, i32, i32
  }
  func.func @transform_1(%arg0: i32) -> (i32, i32) {
    %c0_i32 = arith.constant 0 : i32
    %c0_i32_0 = arith.constant 0 : i32
    %c0_i32_1 = arith.constant 0 : i32
    return %c0_i32, %c0_i32_0 : i32, i32
  }
  func.func @transform_2(%arg0: i32) -> (i32, i32) {
    %c0_i32 = arith.constant 0 : i32
    %c0_i32_0 = arith.constant 0 : i32
    %c0_i32_1 = arith.constant 0 : i32
    return %c0_i32, %c0_i32_0 : i32, i32
  }
  func.func @transform_3(%arg0: i32) -> (i32, i32, i32) {
    %c0_i32 = arith.constant 0 : i32
    %c0_i32_0 = arith.constant 0 : i32
    %c0_i32_1 = arith.constant 0 : i32
    return %arg0, %c0_i32, %c0_i32_0 : i32, i32, i32
  }
}

</mosaic_0001>

<bundles_post_ra>
// kernel: tpu_custom_call.1
= control target key start
LH: loop header
LB: loop body
LE: loop exit
PB: predicated region body
PF: predicated region fallthrough
CT: control target
= control target key end

     0   :  { %8 = vsyncpa [#allocation3], 0  ;;  %s1517_s0 = inlined_call_operand.hbm [shape: f32[2,16,32], index: 0, kind: input, shape index: {}]   ;;  %s1518_s1 = inlined_call_operand.hbm [shape: f32[32,96], index: 1, kind: input, shape index: {}]   ;;  %s1519_s2 = inlined_call_operand.vmem [shape: f32[1,96], index: 2, kind: input, shape index: {}]   ;;  %s1520_s3 = inlined_call_operand.hbm [shape: f32[2,16,32], index: 3, kind: output, shape index: {}]  }
   0x1   :  { %10 = vsyncpa [#allocation3 + $0x1], 0 }
   0x2   :  { %11 = vsyncpa [#allocation6], 0 }
   0x3   :  { %12 = vsyncpa [#allocation4], 0 }
   0x4   :  { %14 = vsyncpa [#allocation4 + $0x1], 0  ;;  %s1221_s12 = smov 0   ;;  %s1223_s13 = smov 0  }
   0x5   :  { %s1225_s14 = smov 0   ;;  %s1227_s15 = smov 0  }
   0x6 LB: > { %s1242_s16 = sadd.s32 4294967295, %s1181_s15   ;;  %s878_s17 = sadd.s32 4294967294, %s1181_s15   ;;  %s1181_s15 = sphi %s1227_s15, %s1532_s15   ;;  %s1177_s14 = sphi %s1225_s14, %s1531_s14   ;;  %s1173_s13 = sphi %s1223_s13, %s1530_s13   ;;  %s1169_s12 = sphi %s1221_s12, %s1529_s12  }
   0x7   : > { %p40_p0 = scmp.ne.s32.totalorder %s1173_s13, %s1169_s12  ;;  %p41_p1 = scmp.eq.s32.totalorder %s1242_s16, 0 }
   0x8   : > { %p106_p2 = scmp.eq.s32.totalorder %s1242_s16, 1  ;;  %p112_p3 = scmp.eq.s32.totalorder %s878_s17, 1 }
   0x9   : > { %p1251_p4 = por %p41_p1, %p40_p0  ;;  %p879_p5 = scmp.ge.s32.totalorder %s1181_s15, 1 }
   0xa   : > { %p1256_p6 = por %p112_p3, %p40_p0  ;;  %p119_p7 = scmp.lt.s32.totalorder %s1181_s15, 3 }
   0xb   : > { %s130_s22 = sshll.u32 %s1518_s1, 4  ;;  %s1183_s24 = smov [#allocation5]   ;;  %s131_s22 = int_to_ptr.hbm [resolvable:$true] %s130_s22 }
   0xc   : > { %p1264_p8 = pnand %p879_p5, %p119_p7  ;;  %s132_s25 = sshll.u32 %s1183_s24, 4  ;;  %s133_s25 = int_to_ptr.vmem [resolvable:$true] %s132_s25 }
   0xd   : > { %s1274_s26 = sadd.s32 1, %s1181_s15   ;;  %s1184_s27 = smov 128  }
   0xe   : > { %p932_p9 = pneg %p1264_p8  ;;  %s1185_s28 = smov 8  }
   0xf   : > { %s24_s29 = ssub.s32 %s1181_s15, %s1274_s26  ;;  %s27_s30 = sadd.s32 1, %s1177_s14 }
  0x10   : > { %p933_p10 = pnand %p932_p9, %p41_p1  ;;  %p25_p12 = scmp.eq.s32.totalorder %s24_s29, 0 }
  0x11   : > { %p34_p13 = scmp.ne.s32.totalorder %s1177_s14, %s1173_s13  ;;  %p35_p0 = scmp.eq.s32.totalorder %s1181_s15, 0 }
  0x12   : > { %935 = dma.hbm_to_vmem [thread:$0]  (!%p933_p10), %s131_s22, 512, %s133_s25, [#allocation6], %s1184_s27, %s1184_s27, %s1185_s28  }
  0x13   : > { %s1286_s4 = scalar_select %p25_p12, %s1177_s14, %s27_s30  }
  0x14   : > { %p1290_p3 = por %p106_p2, %p34_p13  ;;  %p945_p5 = scmp.lt.s32.totalorder %s1181_s15, 2 }
  0x15   : > { %s149_s6 = sand.u32 1, %s1177_s14   ;;  %s920_s7 = sshll.u32 %s1181_s15, 4 }
  0x16   : > { %p36_p7 = por %p35_p0, %p34_p13  ;;  %s882_s8 = sshll.u32 %s149_s6, 4 }
  0x17   : > { %s158_s11 = scalar_lea.hbm %s1517_s0, %s920_s7  ;;  %s153_s20 = scalar_lea.vmem [#allocation2], %s882_s8 }
  0x18   : > { %s159_s17 = sshll.u32 %s158_s11, 4  ;;  %s161_s21 = sshll.u32 %s153_s20, 4  ;;  %s160_s17 = int_to_ptr.hbm [resolvable:$true] %s159_s17  ;;  %s162_s21 = int_to_ptr.vmem [resolvable:$true] %s161_s21 }
  0x19   : > { %p1300_p9 = pnand %p945_p5, %p36_p7  ;;  %s150_s24 = scalar_lea.sflag [#allocation3], %s149_s6 }
  0x1a   : > { %s1081_s25 = sshra.s32 %s160_s17, 4  ;;  %s1088_s8 = scalar_lea.hbm %s1517_s0, 32  ;;  %s1082_s25 = int_to_ptr.hbm [resolvable:$true] %s1081_s25 }
  0x1b   : > { %s1083_s29 = scalar_lea.hbm %s1082_s25, 16  ;;  %p1085_p10 = pneg %p1300_p9 }
  0x1c   : > { %p1084_p2 = scmp.ne.s32.totalorder %s1082_s25, %s1083_s29  ;;  %p1089_p0 = scmp.lt.s32.totalorder %s1082_s25, %s1517_s0 }
  0x1d   : > { %p1090_p5 = scmp.lt.s32.totalorder %s1088_s8, %s1083_s29 }
  0x1e   : > { %p1086_p12 = pnand %p1085_p10, %p1084_p2 }
  0x1f   : > { %p1091_p7 = por %p1090_p5, %p1089_p0 }
  0x20   : > { %p1087_p13 = pneg %p1086_p12 }
  0x22   : > { %p1092_p11 = pnand %p1091_p7, %p1087_p13 }
  0x24   : > { %1095 = shalt.err (!%p1092_p11)
}
  0x25   : > { %939 = dma.hbm_to_vmem [thread:$0]  (!%p1300_p9), %s160_s17, 256, %s162_s21, %s150_s24, %s1184_s27, %s1184_s27, %s1185_s28  }
  0x26   : > { %173 = sbr.rel (%p1264_p8) target bundleno = 1125 (0x465), region = 32  ;;  %s1320_s6 = sand.u32 (!%p1264_p8), 1, %s1173_s13  }
  0x27   : > { %s886_s11 = sshll.u32 (!%p1264_p8), %s1320_s6, 4  ;;  %s176_s20 = scalar_lea.sflag (!%p1264_p8), [#allocation3], %s1320_s6 }
  0x28   : > { %s179_s25 = scalar_lea.vmem (!%p1264_p8), [#allocation2], %s886_s11 }
  0x2b   : > { %1156 = dma.done.wait (%p1251_p4), %s176_s20, 256  }
  0x2c   : > { %1158 = vsyncadd (%p1251_p4), %s176_s20, 4294967040 }
  0x2d   : > { %1160 = dma.done.wait (%p41_p1), [#allocation6], 512  }
  0x2e   : > { %1162 = vsyncadd (%p41_p1), [#allocation6], 4294966784  ;;  %v213_v0 = vld [vmem:[#allocation5 + $0x18] sm:$0xff]  ;;  %v212_v1 = vld [vmem:[#allocation5 + $0x10] sm:$0xff]  ;;  %vm218_vm0 = vcmask 261120   ;;  %s1186_s27 = smov 120  }
  0x2f   : > { %237 = vmatpush.msra.mxu0 %v213_v0  ;;  %v211_v2 = vld [vmem:[#allocation5 + $0x8] sm:$0xff]  ;;  %v210_v3 = vld [vmem:[#allocation5] sm:$0xff]  ;;  %s1187_s28 = smov 88   ;;  %s1188_s17 = smov 96   ;;  %vm254_vm1 = vcmask 64512   ;;  %vm288_vm2 = vcmask 130048  }
  0x30   : > { %v208_v4 = vld [vmem:[%s179_s25] sm:$0xff]  ;;  %v209_v5 = vld [vmem:[%s179_s25 + $0x8] sm:$0xff]  ;;  %s1189_s21 = smov 72   ;;  %s1190_s22 = smov 64  }
  0x31   : > { %238 = vmatpush.msra.mxu0 %v212_v1  ;;  %v1018_v6 = vld [vmem:[%s1519_s2] ss:$0 sm:$0xff]  ;;  %s1191_s24 = smov 80   ;;  %s1192_s29 = smov 104  }
  0x32   : > { %s1193_s30 = smov 112   ;;  %s1194_s7 = smov 56  }
  0x33   : > { %239 = vmatpush.msra.mxu0 %v211_v2  ;;  %s1195_s8 = smov 40   ;;  %s1196_s9 = smov 48  }
  0x34   : > { %s1197_s10 = smov 8   ;;  %s1198_s20 = smov 24  }
  0x35   : > { %240 = vmatpush.msra.mxu0 %v210_v3  ;;  %s1452_s25 = scalar_lea.vmem [#allocation7], %s886_s11  ;;  %s1199_s18 = smov 16  }
  0x36   : > { %889 = vmatmul.msk.f32.vlgmr.msra.gmra.mxu0 %vm218_vm0, %v208_v4  ;;  %s921_s11 = sshll.u32 %s1242_s16, 4 }
  0x3e   : > { %890 = vmatmul.msk.f32.gmra.mxu0 %vm218_vm0, %v209_v5 }
  0xb3   : > { %v242_v7 = vpop.f32.mrf.mxu0 }
  0xb4   : > { %v243_v8 = vadd.f32 %v1018_v6, %v242_v7 }
  0xb6   : > { %374 = vrot.lane.b32.xlu2 %v243_v8, %s1186_s27  ;;  %378 = vrot.lane.b32.xlu1 %v243_v8, %s1187_s28 }
  0xbb   : > { %v245_v9 = vpop.f32.mrf.mxu0 }
  0xbc   : > { %v246_v10 = vadd.f32 %v1018_v6, %v245_v9 }
  0xbe   : > { %252 = vrot.lane.b32.xlu0 %v246_v10, %s1188_s17  ;;  %380 = vrot.lane.b32.xlu1 %v246_v10, %s1187_s28  ;;  %v1337_v11 = vpack.i.bf16 %v243_v8, %v246_v10  ;;  %s791_s28 = scalar_lea.hbm %s1520_s3, %s921_s11 }
  0xc6   : > { %650 = vrot.lane.b32.xlu1 %v246_v10, %s1189_s21  ;;  %250 = vrot.lane.b32.xlu0 %v243_v8, %s1188_s17  ;;  %s792_s17 = sshll.u32 %s1452_s25, 4  ;;  %s793_s17 = int_to_ptr.vmem [resolvable:$true] %s792_s17 }
  0xce   : > { %999 = vrot.lane.b32.xlu1 %v1337_v11, %s1190_s22  ;;  %376 = vrot.lane.b32.xlu0 %v246_v10, %s1186_s27  ;;  %s780_s22 = scalar_lea.sflag [#allocation4], %s1320_s6 }
  0xd6   : > { %515 = vrot.lane.b32.xlu1 %v246_v10, %s1191_s24  ;;  %648 = vrot.lane.b32.xlu0 %v243_v8, %s1189_s21  ;;  %s794_s21 = sshll.u32 %s791_s28, 4  ;;  %s795_s21 = int_to_ptr.hbm [resolvable:$true] %s794_s21 }
  0xde   : > { %646 = vrot.lane.b32.xlu1 %v246_v10, %s1192_s29  ;;  %644 = vrot.lane.b32.xlu0 %v243_v8, %s1192_s29 }
  0xe6   : > { %511 = vrot.lane.b32.xlu1 %v246_v10, %s1193_s30  ;;  %513 = vrot.lane.b32.xlu0 %v243_v8, %s1191_s24  ;;  %s1125_s24 = sshra.s32 %s795_s21, 4  ;;  %s1126_s24 = int_to_ptr.hbm [resolvable:$true] %s1125_s24 }
  0xe7   : > { %s1127_s29 = scalar_lea.hbm %s1126_s24, 16  ;;  %p1132_p11 = scmp.lt.s32.totalorder %s1126_s24, %s1520_s3 }
  0xe8   : > { %p1128_p1 = scmp.ne.s32.totalorder %s1126_s24, %s1127_s29 }
  0xea   : > { %p1129_p4 = pnand %p1128_p1, %p1290_p3 }
  0xec   : > { %p1130_p8 = pneg %p1129_p4 }
  0xee   : > { %509 = vrot.lane.b32.xlu0 %v243_v8, %s1193_s30 }
 0x110   : > { %v375_v15 = vpop.permute.xlu2 %374 }
 0x128   : > { %v379_v12 = vpop.permute.xlu1 %378 }
 0x130   : > { %v253_v13 = vpop.permute.xlu0 %252  ;;  %v381_v14 = vpop.permute.xlu1 %380 }
 0x131   : > { %891 = vmatpush.xpose.msk.msra.mxu1 %vm254_vm1, %v253_v13  ;;  %897 = vmatpush.xpose.msk.msra.mxu3 %vm254_vm1, %v381_v14 }
 0x135   : > { %898 = vmatpush.xpose.msk.msra.mxu3 %vm254_vm1, %v379_v12 }
 0x138   : > { %899 = vmatmul.msk.f32.vlgmr.msra.gmra.mxu3 %vm254_vm1, %v375_v15  ;;  %v651_v16 = vpop.permute.xlu1 %650  ;;  %v251_v17 = vpop.permute.xlu0 %250 }
 0x139   : > { %892 = vmatpush.xpose.msk.msra.mxu1 %vm254_vm1, %v251_v17  ;;  %909 = vmatpush.xpose.msk.msrb.mxu3 %vm254_vm1, %v651_v16 }
 0x13c   : > { %893 = vmatmul.msk.f32.vlgmr.msra.gmra.mxu1 %vm254_vm1, %v243_v8 }
 0x140   : > { %v1000_v18 = vpop.permute.xlu1 %999  ;;  %v377_v19 = vpop.permute.xlu0 %376 }
 0x141   : > { %900 = vmatmul.msk.f32.gmra.mxu3 %vm254_vm1, %v377_v19  ;;  %v1001_v20 = vunpack.i.l.bf16 %v1000_v18  ;;  %v1002_v21 = vunpack.i.h.bf16 %v1000_v18 }
 0x143   : > { %333 = vmatpush.msrb.mxu0 %v1001_v20  ;;  %922 = vmatpush.msra.mxu2 %v1001_v20 }
 0x144   : > { %894 = vmatmul.msk.f32.gmra.mxu1 %vm254_vm1, %v246_v10 }
 0x145   : > { %334 = vmatpush.msrb.mxu0 %v1002_v21  ;;  %923 = vmatpush.msra.mxu2 %v1002_v21 }
 0x148   : > { %v516_v22 = vpop.permute.xlu1 %515  ;;  %v649_v23 = vpop.permute.xlu0 %648 }
 0x149   : > { %903 = vmatpush.xpose.msk.msra.mxu0 %vm254_vm1, %v516_v22  ;;  %910 = vmatpush.xpose.msk.msrb.mxu3 %vm254_vm1, %v649_v23 }
 0x150   : > { %v645_v24 = vpop.permute.xlu0 %644  ;;  %v647_v25 = vpop.permute.xlu1 %646 }
 0x151   : > { %911 = vmatmul.msk.f32.vlgmr.msrb.gmra.mxu3 %vm254_vm1, %v645_v24 }
 0x158   : > { %v514_v26 = vpop.permute.xlu0 %513  ;;  %v512_v54 = vpop.permute.xlu1 %511 }
 0x159   : > { %904 = vmatpush.xpose.msk.msra.mxu0 %vm254_vm1, %v514_v26  ;;  %912 = vmatmul.msk.f32.gmra.mxu3 %vm254_vm1, %v647_v25 }
 0x160   : > { %v510_v45 = vpop.permute.xlu0 %509 }
 0x1b9   : > { %v280_v27 = vpop.f32.mrf.mxu1 }
 0x1ba   : > { %v286_v28 = vmul.f32 0.35355338, %v280_v27 }
 0x1bb   : > { %v407_v29 = vpop.f32.mrf.mxu3 }
 0x1bc   : > { %v413_v30 = vmul.f32 0.35355338, %v407_v29  ;;  %v289_v31 = vsel %vm288_vm2, %v286_v28, -inf }
 0x1bd   : > { %290 = vmax.xlane.f32.xlu2 %v289_v31 }
 0x1be   : > { %v415_v32 = vsel %vm288_vm2, %v413_v30, -inf }
 0x1bf   : > { %416 = vmax.xlane.f32.xlu0 %v415_v32 }
 0x1c1   : > { %v283_v33 = vpop.f32.mrf.mxu1 }
 0x1c2   : > { %v287_v34 = vmul.f32 0.35355338, %v283_v33 }
 0x1c4   : > { %v410_v35 = vpop.f32.mrf.mxu3  ;;  %v292_v36 = vsel %vm288_vm2, %v287_v34, -inf }
 0x1c5   : > { %v414_v37 = vmul.f32 0.35355338, %v410_v35  ;;  %293 = vmax.xlane.f32.xlu2 %v292_v36 }
 0x1c7   : > { %v418_v38 = vsel %vm288_vm2, %v414_v37, -inf }
 0x1c8   : > { %419 = vmax.xlane.f32.xlu1 %v418_v38 }
 0x1d4   : > { %v677_v39 = vpop.f32.mrf.mxu3 }
 0x1d5   : > { %v1360_v43 = vmul.f32 0.35355338, %v677_v39 }
 0x1d7   : > { %v685_v44 = vsel %vm288_vm2, %v1360_v43, -inf }
 0x1dc   : > { %v680_v40 = vpop.f32.mrf.mxu3 }
 0x1dd   : > { %v684_v41 = vmul.f32 0.35355338, %v680_v40  ;;  %1004 = vrot.lane.b32.xlu2 %v1337_v11, %s1194_s7  ;;  %s1131_s7 = scalar_lea.hbm %s1520_s3, 32 }
 0x1de   : > { %p1133_p9 = scmp.lt.s32.totalorder %s1131_s7, %s1127_s29 }
 0x1df   : > { %v688_v42 = vsel %vm288_vm2, %v684_v41, -inf }
 0x1e0   : > { %689 = vmax.xlane.f32.xlu1 %v688_v42  ;;  %p1134_p2 = por %p1133_p9, %p1132_p11 }
 0x1e2   : > { %p1135_p10 = pnand %p1134_p2, %p1130_p8 }
 0x206   : > { %686 = vmax.xlane.f32.xlu2 %v685_v44 }
 0x230   : > { %v291_v46 = vpop.xlane.xlu2 %290 }
 0x231   : > { %v295_v47 = vsub.f32 %v286_v28, %v291_v46 }
 0x232   : > { %v417_v48 = vpop.xlane.xlu0 %416 }
 0x233   : > { %v297_v49 = vmul.f32 1.442695, %v295_v47  ;;  %v421_v50 = vsub.f32 %v413_v30, %v417_v48 }
 0x235   : > { %1019 = vpow2.f32 %v297_v49  ;;  %v423_v51 = vmul.f32 1.442695, %v421_v50 }
 0x237   : > { %1021 = vpow2.f32 %v423_v51 }
 0x238   : > { %v294_v52 = vpop.xlane.xlu2 %293 }
 0x239   : > { %v296_v53 = vsub.f32 %v287_v34, %v294_v52 }
 0x23b   : > { %v1364_v55 = vpop.eup %1019  ;;  %v299_v56 = vmul.f32 1.442695, %v296_v53  ;;  %v420_v61 = vpop.xlane.xlu1 %419 }
 0x23c   : > { %895 = vmatmul.msk.f32.vlgmr.msrb.gmra.mxu0 %vm288_vm2, %v1364_v55  ;;  %v422_v0 = vsub.f32 %v414_v37, %v420_v61  ;;  %v301_v48 = vsel %vm288_vm2, %v1364_v55, 0.0 }
 0x23d   : > { %v1022_v57 = vpop.eup %1021  ;;  %1023 = vpow2.f32 %v299_v56 }
 0x23e   : > { %v427_v58 = vsel %vm288_vm2, %v1022_v57, 0.0  ;;  %v425_v1 = vmul.f32 1.442695, %v422_v0 }
 0x23f   : > { %428 = vadd.xlane.f32.xlu2 %v427_v58 }
 0x240   : > { %v1005_v59 = vpop.permute.xlu2 %1004  ;;  %1025 = vpow2.f32 %v425_v1 }
 0x241   : > { %v1006_v60 = vunpack.i.l.bf16 %v1005_v59  ;;  %v1007_v63 = vunpack.i.h.bf16 %v1005_v59 }
 0x243   : > { %v1369_v62 = vpop.eup %1023  ;;  %459 = vmatpush.msrb.mxu2 %v1006_v60 }
 0x244   : > { %896 = vmatmul.msk.f32.vlgmr.msra.gmra.mxu2 %vm288_vm2, %v1369_v62  ;;  %905 = vmatmul.msk.f32.vlgmr.msra.gmra.mxu0 %vm254_vm1, %v510_v45  ;;  %v304_v52 = vsel %vm288_vm2, %v1369_v62, 0.0 }
 0x245   : > { %460 = vmatpush.msrb.mxu2 %v1007_v63 }
 0x246   : > { %v1026_v2 = vpop.eup %1025 }
 0x247   : > { %v430_v22 = vsel %vm288_vm2, %v1026_v2, 0.0 }
 0x24c   : > { %901 = vmatmul.msk.f32.vlgmr.msrb.gmra.mxu2 %vm288_vm2, %v1022_v57  ;;  %906 = vmatmul.msk.f32.gmra.mxu0 %vm254_vm1, %v512_v54 }
 0x253   : > { %v690_v3 = vpop.xlane.xlu1 %689 }
 0x254   : > { %v692_v4 = vsub.f32 %v684_v41, %v690_v3  ;;  %902 = vmatmul.msk.f32.gmra.mxu2 %vm288_vm2, %v1026_v2 }
 0x256   : > { %v695_v5 = vmul.f32 1.442695, %v692_v4 }
 0x258   : > { %1027 = vpow2.f32 %v695_v5 }
 0x25e   : > { %v1377_v6 = vpop.eup %1027 }
 0x25f   : > { %v700_v7 = vsel %vm288_vm2, %v1377_v6, 0.0 }
 0x260   : > { %701 = vadd.xlane.f32.xlu2 %v700_v7 }
 0x279   : > { %v687_v16 = vpop.xlane.xlu2 %686 }
 0x27a   : > { %v691_v19 = vsub.f32 %v1360_v43, %v687_v16 }
 0x27c   : > { %v693_v21 = vmul.f32 1.442695, %v691_v19 }
 0x2b2   : > { %v429_v17 = vpop.xlane.xlu2 %428 }
 0x2b3   : > { %1029 = vrcp.f32 %v429_v17  ;;  %vm473_vm4 = vweird.f32 %v429_v17  ;;  %v477_v28 = vand.u32 2147483647, %v429_v17 }
 0x2b4   : > { %1031 = vpow2.f32 %v693_v21 }
 0x2b5   : > { %vm478_vm6 = vcmp.eq.f32.partialorder %v477_v28, 8.507059e+37 }
 0x2b9   : > { %v1381_v8 = vpop.f32.mrf.mxu0  ;;  %v1030_v18 = vpop.eup %1029 }
 0x2ba   : > { %v469_v20 = vmul.f32 %v1030_v18, %v429_v17  ;;  %v1032_v26 = vpop.eup %1031  ;;  %vm474_vm3 = vweird.f32 %v1030_v18 }
 0x2bb   : > { %v697_v29 = vsel %vm288_vm2, %v1032_v26, 0.0  ;;  %vm475_vm5 = vmor %vm473_vm4, %vm474_vm3 }
 0x2bc   : > { %v470_v23 = vsub.f32 1.0, %v469_v20 }
 0x2be   : > { %v471_v25 = vmul.f32 %v1030_v18, %v470_v23 }
 0x2c0   : > { %v472_v27 = vadd.f32 %v1030_v18, %v471_v25 }
 0x2c1   : > { %v542_v9 = vpop.f32.mrf.mxu0 }
 0x2c2   : > { %v548_v10 = vmul.f32 0.35355338, %v542_v9  ;;  %v476_v30 = vsel %vm475_vm5, %v1030_v18, %v472_v27 }
 0x2c4   : > { %v550_v12 = vsel %vm288_vm2, %v548_v10, -inf }
 0x2c5   : > { %551 = vmax.xlane.f32.xlu0 %v550_v12 }
 0x2c7   : > { %v1389_v24 = vpop.f32.mrf.mxu2 }
 0x2c9   : > { %v545_v13 = vpop.f32.mrf.mxu0 }
 0x2ca   : > { %v549_v14 = vmul.f32 0.35355338, %v545_v13 }
 0x2cc   : > { %v553_v15 = vsel %vm288_vm2, %v549_v14, -inf }
 0x2cd   : > { %554 = vmax.xlane.f32.xlu1 %v553_v15 }
 0x2cf   : > { %v462_v31 = vpop.f32.mrf.mxu2 }
 0x2d3   : > { %v1405_v2 = vpop.xlane.xlu2 %701 }
 0x2d7   : > { %v465_v63 = vpop.f32.mrf.mxu2 }
 0x2d9   : > { %1009 = vrot.lane.b32.xlu0 %v1337_v11, %s1195_s8 }
 0x2e6   : > { %1014 = vrot.lane.b32.xlu1 %v1337_v11, %s1196_s9  ;;  %v479_v11 = vand.u32 2147483648, %v429_v17 }
 0x2e8   : > { %v480_v32 = vor.u32 1.1754944e-38, %v479_v11 }
 0x2ea   : > { %v481_v33 = vsel %vm478_vm6, %v480_v32, %v476_v30 }
 0x2eb   : > { %v496_v34 = vmul.f32 %v481_v33, %v462_v31 }
 0x303   : > { %431 = vadd.xlane.f32.xlu0 %v430_v22 }
 0x310   : > { %698 = vadd.xlane.f32.xlu1 %v697_v29 }
 0x317   : > { %500 = vrot.lane.b32.xlu0 %v496_v34, %s1197_s10 }
 0x338   : > { %v552_v35 = vpop.xlane.xlu0 %551 }
 0x339   : > { %v556_v36 = vsub.f32 %v548_v10, %v552_v35 }
 0x33b   : > { %v558_v37 = vmul.f32 1.442695, %v556_v36 }
 0x33d   : > { %1033 = vpow2.f32 %v558_v37 }
 0x340   : > { %v555_v38 = vpop.xlane.xlu1 %554 }
 0x341   : > { %v557_v39 = vsub.f32 %v549_v14, %v555_v38 }
 0x343   : > { %v1034_v40 = vpop.eup %1033  ;;  %v560_v41 = vmul.f32 1.442695, %v557_v39 }
 0x344   : > { %v562_v42 = vsel %vm288_vm2, %v1034_v40, 0.0 }
 0x345   : > { %1035 = vpow2.f32 %v560_v41  ;;  %563 = vadd.xlane.f32.xlu2 %v562_v42 }
 0x34b   : > { %v1036_v43 = vpop.eup %1035  ;;  %v1010_v44 = vpop.permute.xlu0 %1009 }
 0x34c   : > { %v1011_v45 = vunpack.i.l.bf16 %v1010_v44  ;;  %v565_v46 = vsel %vm288_vm2, %v1036_v43, 0.0  ;;  %v1012_v47 = vunpack.i.h.bf16 %v1010_v44 }
 0x34d   : > { %566 = vadd.xlane.f32.xlu2 %v565_v46 }
 0x34e   : > { %729 = vmatpush.msra.mxu2 %v1011_v45 }
 0x350   : > { %730 = vmatpush.msra.mxu2 %v1012_v47 }
 0x351   : > { %913 = vmatmul.msk.f32.vlgmr.msra.gmra.mxu2 %vm288_vm2, %v1032_v26 }
 0x355   : > { %302 = vadd.xlane.f32.xlu2 %v301_v48 }
 0x358   : > { %v1015_v49 = vpop.permute.xlu1 %1014 }
 0x359   : > { %914 = vmatmul.msk.f32.gmra.mxu2 %vm288_vm2, %v1377_v6  ;;  %v1016_v50 = vunpack.i.l.bf16 %v1015_v49  ;;  %v1017_v51 = vunpack.i.h.bf16 %v1015_v49 }
 0x35b   : > { %594 = vmatpush.msrb.mxu1 %v1016_v50 }
 0x35d   : > { %595 = vmatpush.msrb.mxu1 %v1017_v51  ;;  %305 = vadd.xlane.f32.xlu2 %v304_v52 }
 0x35e   : > { %907 = vmatmul.msk.f32.vlgmr.msrb.gmra.mxu1 %vm288_vm2, %v1034_v40 }
 0x366   : > { %908 = vmatmul.msk.f32.gmra.mxu1 %vm288_vm2, %v1036_v43 }
 0x376   : > { %v432_v53 = vpop.xlane.xlu0 %431 }
 0x377   : > { %1037 = vrcp.f32 %v432_v53  ;;  %v493_v57 = vand.u32 2147483648, %v432_v53  ;;  %v491_v59 = vand.u32 2147483647, %v432_v53  ;;  %vm487_vm8 = vweird.f32 %v432_v53 }
 0x379   : > { %v494_v61 = vor.u32 1.1754944e-38, %v493_v57  ;;  %vm492_vm10 = vcmp.eq.f32.partialorder %v491_v59, 8.507059e+37 }
 0x37d   : > { %v1038_v54 = vpop.eup %1037 }
 0x37e   : > { %v483_v55 = vmul.f32 %v1038_v54, %v432_v53  ;;  %vm488_vm7 = vweird.f32 %v1038_v54 }
 0x37f   : > { %vm489_vm9 = vmor %vm487_vm8, %vm488_vm7  ;;  %vm506_vm8 = vcmask 130112  }
 0x380   : > { %v484_v56 = vsub.f32 1.0, %v483_v55 }
 0x382   : > { %v485_v58 = vmul.f32 %v1038_v54, %v484_v56 }
 0x383   : > { %v699_v3 = vpop.xlane.xlu1 %698 }
 0x384   : > { %v486_v60 = vadd.f32 %v1038_v54, %v485_v58  ;;  %1039 = vrcp.f32 %v699_v3  ;;  %v749_v18 = vand.u32 2147483648, %v699_v3  ;;  %vm743_vm12 = vweird.f32 %v699_v3 }
 0x385   : > { %v747_v19 = vand.u32 2147483647, %v699_v3 }
 0x386   : > { %v490_v62 = vsel %vm489_vm9, %v1038_v54, %v486_v60  ;;  %v750_v27 = vor.u32 1.1754944e-38, %v749_v18 }
 0x387   : > { %v495_v0 = vsel %vm492_vm10, %v494_v61, %v490_v62  ;;  %vm748_vm14 = vcmp.eq.f32.partialorder %v747_v19, 8.507059e+37 }
 0x388   : > { %v497_v1 = vmul.f32 %v495_v0, %v465_v63 }
 0x389   : > { %v501_v57 = vpop.permute.xlu0 %500 }
 0x38a   : > { %502 = vrot.lane.b32.xlu2 %v497_v1, %s1197_s10  ;;  %v1040_v5 = vpop.eup %1039 }
 0x38b   : > { %v739_v6 = vmul.f32 %v1040_v5, %v699_v3  ;;  %vm744_vm11 = vweird.f32 %v1040_v5 }
 0x38c   : > { %vm745_vm13 = vmor %vm743_vm12, %vm744_vm11 }
 0x38d   : > { %v740_v9 = vsub.f32 1.0, %v739_v6 }
 0x38f   : > { %v741_v14 = vmul.f32 %v1040_v5, %v740_v9 }
 0x391   : > { %v742_v17 = vadd.f32 %v1040_v5, %v741_v14  ;;  %v763_v14 = vand.u32 2147483648, %v1405_v2 }
 0x393   : > { %v746_v25 = vsel %vm745_vm13, %v1040_v5, %v742_v17  ;;  %v764_v17 = vor.u32 1.1754944e-38, %v763_v14 }
 0x394   : > { %v751_v31 = vsel %vm748_vm14, %v750_v27, %v746_v25 }
 0x3b8   : > { %v1407_v4 = vpop.xlane.xlu2 %563 }
 0x3b9   : > { %1041 = vrcp.f32 %v1407_v4  ;;  %vm608_vm2 = vweird.f32 %v1407_v4  ;;  %v614_v38 = vand.u32 2147483648, %v1407_v4  ;;  %v612_v41 = vand.u32 2147483647, %v1407_v4 }
 0x3bb   : > { %v615_v50 = vor.u32 1.1754944e-38, %v614_v38  ;;  %vm613_vm7 = vcmp.eq.f32.partialorder %v612_v41, 8.507059e+37 }
 0x3bf   : > { %v1412_v10 = vpop.eup %1041 }
 0x3c0   : > { %v1410_v7 = vpop.xlane.xlu2 %566  ;;  %v604_v12 = vmul.f32 %v1412_v10, %v1407_v4  ;;  %vm609_vm15 = vweird.f32 %v1412_v10 }
 0x3c1   : > { %1043 = vrcp.f32 %v1410_v7  ;;  %vm1434_vm4 = vmor %vm608_vm2, %vm609_vm15  ;;  %vm622_vm11 = vweird.f32 %v1410_v7  ;;  %v626_v62 = vand.u32 2147483647, %v1410_v7 }
 0x3c2   : > { %v605_v16 = vsub.f32 1.0, %v604_v12 }
 0x3c4   : > { %v606_v26 = vmul.f32 %v1412_v10, %v605_v16 }
 0x3c6   : > { %v607_v35 = vadd.f32 %v1412_v10, %v606_v26 }
 0x3c7   : > { %v1417_v15 = vpop.eup %1043 }
 0x3c8   : > { %v303_v13 = vpop.xlane.xlu2 %302  ;;  %v618_v21 = vmul.f32 %v1417_v15, %v1410_v7  ;;  %v611_v47 = vsel %vm1434_vm4, %v1412_v10, %v607_v35  ;;  %vm623_vm9 = vweird.f32 %v1417_v15 }
 0x3c9   : > { %1045 = vrcp.f32 %v303_v13  ;;  %v353_v30 = vand.u32 2147483648, %v303_v13  ;;  %v351_v33 = vand.u32 2147483647, %v303_v13  ;;  %vm347_vm3 = vweird.f32 %v303_v13  ;;  %vm624_vm13 = vmor %vm622_vm11, %vm623_vm9 }
 0x3ca   : > { %1047 = vrcp.f32 %v1405_v2  ;;  %v619_v29 = vsub.f32 1.0, %v618_v21  ;;  %v616_v55 = vsel %vm613_vm7, %v615_v50, %v611_v47 }
 0x3cb   : > { %v354_v43 = vor.u32 1.1754944e-38, %v353_v30  ;;  %vm352_vm6 = vcmp.eq.f32.partialorder %v351_v33, 8.507059e+37 }
 0x3cc   : > { %v620_v44 = vmul.f32 %v1417_v15, %v619_v29 }
 0x3ce   : > { %v621_v56 = vadd.f32 %v1417_v15, %v620_v44 }
 0x3cf   : > { %v1046_v20 = vpop.eup %1045 }
 0x3d0   : > { %v343_v22 = vmul.f32 %v1046_v20, %v303_v13  ;;  %v1422_v23 = vpop.xlane.xlu2 %305  ;;  %v1426_v11 = vpop.eup %1047  ;;  %vm348_vm0 = vweird.f32 %v1046_v20  ;;  %v625_v3 = vsel %vm624_vm13, %v1417_v15, %v621_v56 }
 0x3d1   : > { %1049 = vrcp.f32 %v1422_v23  ;;  %v753_v36 = vmul.f32 %v1426_v11, %v1405_v2  ;;  %vm349_vm5 = vmor %vm347_vm3, %vm348_vm0  ;;  %v367_v53 = vand.u32 2147483648, %v1422_v23  ;;  %v365_v59 = vand.u32 2147483647, %v1422_v23 }
 0x3d2   : > { %v344_v28 = vsub.f32 1.0, %v343_v22  ;;  %vm361_vm12 = vweird.f32 %v1422_v23  ;;  %vm627_vm0 = vcmp.eq.f32.partialorder %v626_v62, 8.507059e+37  ;;  %vm758_vm2 = vweird.f32 %v1426_v11 }
 0x3d3   : > { %v754_v48 = vsub.f32 1.0, %v753_v36  ;;  %v368_v63 = vor.u32 1.1754944e-38, %v367_v53  ;;  %vm366_vm15 = vcmp.eq.f32.partialorder %v365_v59, 8.507059e+37  ;;  %vm757_vm3 = vweird.f32 %v1405_v2 }
 0x3d4   : > { %v345_v32 = vmul.f32 %v1046_v20, %v344_v28  ;;  %v732_v34 = vpop.f32.mrf.mxu2  ;;  %vm759_vm4 = vmor %vm757_vm3, %vm758_vm2 }
 0x3d5   : > { %v766_v37 = vmul.f32 %v751_v31, %v732_v34  ;;  %v755_v1 = vmul.f32 %v1426_v11, %v754_v48 }
 0x3d6   : > { %v346_v39 = vadd.f32 %v1046_v20, %v345_v32 }
 0x3d7   : > { %v1050_v42 = vpop.eup %1049  ;;  %770 = vrot.lane.b32.xlu2 %v766_v37, %s1198_s20  ;;  %v756_v12 = vadd.f32 %v1426_v11, %v755_v1 }
 0x3d8   : > { %v350_v45 = vsel %vm349_vm5, %v1046_v20, %v346_v39  ;;  %v357_v46 = vmul.f32 %v1050_v42, %v1422_v23  ;;  %vm362_vm10 = vweird.f32 %v1050_v42  ;;  %vm641_vm5 = vcmask 195712  }
 0x3d9   : > { %v355_v49 = vsel %vm352_vm6, %v354_v43, %v350_v45  ;;  %vm363_vm14 = vmor %vm361_vm12, %vm362_vm10  ;;  %v760_v15 = vsel %vm759_vm4, %v1426_v11, %v756_v12  ;;  %vm776_vm6 = vcmask 261312  }
 0x3da   : > { %v370_v51 = vmul.f32 %v355_v49, %v1381_v8  ;;  %v358_v52 = vsub.f32 1.0, %v357_v46  ;;  %v628_v8 = vand.u32 2147483648, %v1410_v7 }
 0x3db   : > { %v597_v54 = vpop.f32.mrf.mxu1 }
 0x3dc   : > { %v359_v58 = vmul.f32 %v1050_v42, %v358_v52  ;;  %v631_v60 = vmul.f32 %v616_v55, %v597_v54  ;;  %372 = vst.msk [vmem:[%s1452_s25] sm:$0xff] %vm254_vm1, %v370_v51  ;;  %v629_v5 = vor.u32 1.1754944e-38, %v628_v8  ;;  %v735_v16 = vpop.f32.mrf.mxu2 }
 0x3dd   : > { %507 = vst.msk [vmem:[%s1452_s25] sm:$0xff] %vm506_vm8, %v501_v57 }
 0x3de   : > { %v360_v61 = vadd.f32 %v1050_v42, %v359_v58  ;;  %635 = vrot.lane.b32.xlu1 %v631_v60, %s1199_s18  ;;  %v630_v10 = vsel %vm627_vm0, %v629_v5, %v625_v3 }
 0x3e0   : > { %v364_v0 = vsel %vm363_vm14, %v1050_v42, %v360_v61 }
 0x3e1   : > { %v369_v4 = vsel %vm366_vm15, %v368_v63, %v364_v0 }
 0x3e2   : > { %v371_v6 = vmul.f32 %v369_v4, %v1389_v24  ;;  %v761_v24 = vand.u32 2147483647, %v1405_v2 }
 0x3e3   : > { %v600_v9 = vpop.f32.mrf.mxu1 }
 0x3e4   : > { %v632_v7 = vmul.f32 %v630_v10, %v600_v9  ;;  %373 = vst.msk [vmem:[%s1452_s25 + $0x8] sm:$0xff] %vm254_vm1, %v371_v6  ;;  %v503_v13 = vpop.permute.xlu2 %502  ;;  %vm762_vm1 = vcmp.eq.f32.partialorder %v761_v24, 8.507059e+37 }
 0x3e5   : > { %508 = vst.msk [vmem:[%s1452_s25 + $0x8] sm:$0xff] %vm506_vm8, %v503_v13  ;;  %v765_v18 = vsel %vm762_vm1, %v764_v17, %v760_v15 }
 0x3e6   : > { %637 = vrot.lane.b32.xlu0 %v632_v7, %s1199_s18  ;;  %v767_v19 = vmul.f32 %v765_v18, %v735_v16 }
 0x3ee   : > { %772 = vrot.lane.b32.xlu0 %v767_v19, %s1198_s20 }
 0x431   : > { %v771_v2 = vpop.permute.xlu2 %770 }
 0x450   : > { %v636_v20 = vpop.permute.xlu1 %635 }
 0x451   : > { %642 = vst.msk [vmem:[%s1452_s25] sm:$0xff] %vm641_vm5, %v636_v20 }
 0x452   : > { %777 = vst.msk [vmem:[%s1452_s25] sm:$0xff] %vm776_vm6, %v771_v2 }
 0x458   : > { %v638_v21 = vpop.permute.xlu0 %637 }
 0x459   : > { %643 = vst.msk [vmem:[%s1452_s25 + $0x8] sm:$0xff] %vm641_vm5, %v638_v21 }
 0x460   : > { %v773_v22 = vpop.permute.xlu0 %772 }
 0x461   : > { %778 = vst.msk [vmem:[%s1452_s25 + $0x8] sm:$0xff] %vm776_vm6, %v773_v22 }
 0x462   : > { %1138 = shalt.err (!%p1135_p10)
}
 0x463   : > { %s1200_s6 = smov 128  }
 0x464   : > { %930 = dma.vmem_to_hbm [thread:$0]  (%p1290_p3), %s793_s17, 256, %s795_s21, %s780_s22, %s1200_s6, %s1200_s6, %s1197_s10  }
 0x465 PF: > { %s809_s20 = sand.u32 1, %s1169_s12   ;;  %p1528_p12 = scmp.ge.s32.totalorder %s1181_s15, 2 }
 0x466   : > { %s810_s25 = scalar_lea.sflag [#allocation4], %s809_s20 }
 0x467   : > { %p941_p13 = pnand %p1528_p12, %p1256_p6 }
 0x469   : > { %p942_p0 = pneg %p941_p13 }
 0x46b   : > { %1164 = dma.done.wait (%p942_p0), %s810_s25, 256  }
 0x46c   : > { %1166 = vsyncadd (%p942_p0), %s810_s25, 4294967040  ;;  %p17_p5 = scmp.ge.s32.totalorder %s1274_s26, 4   ;;  %s1529_s12 = smov %s1173_s13 }
 0x46d   : > { %s1530_s13 = smov %s1177_s14  ;;  %s1531_s14 = smov %s1286_s4 }
 0x46e   : > { %s1532_s15 = smov %s1274_s26  ;;  %19 = sbr.rel (!%p17_p5) target bundleno = 6 (0x6), region = 81 }
 0x473   :  { %816 = vsyncpa [#allocation3], 1 }
 0x474   :  { %818 = vsyncpa [#allocation3 + $0x1], 1 }
 0x475   :  { %819 = vsyncpa [#allocation6], 1 }
 0x476   :  { %820 = vsyncpa [#allocation4], 1 }
 0x477   :  { %822 = vsyncpa [#allocation4 + $0x1], 1 }

</bundles_post_ra>
